<compile_context>
chip_gen: v7x
topology: tpu7x:2x2x1
jax: 0.10.0
libtpu: 0.0.40
codegen_flags: <defaults>
</compile_context>

<pallas_src>
import functools

import jax
import jax.numpy as jnp
from jax.experimental import pallas as pl
from jax.experimental.pallas import tpu as pltpu

CLASS_WEIGHTS = (1.6, 1.0, 1.0)   # deterministic "parameters" from the module __init__
NUM_CLASSES = 3
NUM_SPK = 3
PERMS = ((0, 1, 2), (0, 2, 1), (1, 0, 2), (1, 2, 0), (2, 0, 1), (2, 1, 0))


def _pit_kernel(preds_ref, labels_ref, out_ref, acc_ref, *, t_true, w0, w1, w2):
    # preds_ref:  (1, 9, TS, 128) float  row c*3+s = logits[class c, speaker s], time on (TS,128)
    # labels_ref: (1, 3, TS, 128) int32  row p = label source p
    # out_ref:    (1, 1, 9)       f32    flattened M[p, s] = mean_t w[y_p] * nll[y_p, s]
    # acc_ref:    (9, TS, 128)    f32    running (un-normalized) sums per (p, s)
    k = pl.program_id(1)
    nk = pl.num_programs(1)

    @pl.when(k == 0)
    def _init():
        acc_ref[...] = jnp.zeros_like(acc_ref)

    ts = acc_ref.shape[1]
    tl = acc_ref.shape[2]
    tile_t = ts * tl

    # validity mask for the (possibly ragged) final time tile; padded frames contribute 0.
    t_local = (jax.lax.broadcasted_iota(jnp.int32, (ts, tl), 0) * tl
               + jax.lax.broadcasted_iota(jnp.int32, (ts, tl), 1))
    valid = ((k * tile_t + t_local) < t_true).astype(jnp.float32)

    for s in range(NUM_SPK):
        # log-softmax over the 3 classes of speaker s (computed once, reused for all 3 label sources)
        x0 = preds_ref[0, s].astype(jnp.float32)
        x1 = preds_ref[0, NUM_SPK + s].astype(jnp.float32)
        x2 = preds_ref[0, 2 * NUM_SPK + s].astype(jnp.float32)
        m = jnp.maximum(jnp.maximum(x0, x1), x2)
        lse = m + jnp.log(jnp.exp(x0 - m) + jnp.exp(x1 - m) + jnp.exp(x2 - m))

        for p in range(NUM_SPK):
            y = labels_ref[0, p]                       # (TS, 128) int32
            is0 = y == 0
            is1 = y == 1
            w = jnp.where(is0, w0, jnp.where(is1, w1, w2)) * valid
            picked = jnp.where(is0, x0, jnp.where(is1, x1, x2)) - lse   # logsm[y_p, s]
            i = p * NUM_SPK + s
            acc_ref[i] = acc_ref[i] - w * picked

    @pl.when(k == nk - 1)
    def _finalize():
        sums = jnp.sum(jnp.sum(acc_ref[...], axis=-1), axis=-1)         # (9,)
        out_ref[...] = (sums * (1.0 / float(t_true)))[None, None]       # (1, 1, 9)


def pit_loss(preds, labels, *, time_tile=1024):
    """preds: (B, T, C=3, S=3) float logits; labels: (B, T, S=3) int class ids."""
    B, T, C, S = preds.shape
    assert C == NUM_CLASSES and S == NUM_SPK
    # time tile maps to (time_tile//128 sublanes, 128 lanes); keep sublanes a multiple of 8.
    assert time_tile % 1024 == 0
    ts = time_tile // 128
    n_k = -(-T // time_tile)          # cdiv
    t_pad = n_k * time_tile

    # preds: (B, T, C, S) -> (B, C, S, T) -> (B, 9, t_pad//128, 128)  (channel-major, time dense)
    preds_k = jnp.transpose(preds, (0, 2, 3, 1)).reshape(B, C * S, T)
    preds_k = jnp.pad(preds_k, ((0, 0), (0, 0), (0, t_pad - T)))
    preds_k = preds_k.reshape(B, C * S, t_pad // 128, 128)

    # labels: (B, T, S) -> (B, S, T) -> (B, 3, t_pad//128, 128), int32 (12x cheaper than a woh pass)
    labels_k = jnp.transpose(labels.astype(jnp.int32), (0, 2, 1))
    labels_k = jnp.pad(labels_k, ((0, 0), (0, 0), (0, t_pad - T)))
    labels_k = labels_k.reshape(B, S, t_pad // 128, 128)

    kernel = functools.partial(
        _pit_kernel, t_true=T,
        w0=float(CLASS_WEIGHTS[0]), w1=float(CLASS_WEIGHTS[1]), w2=float(CLASS_WEIGHTS[2]))

    m_flat = pl.pallas_call(
        kernel,
        out_shape=jax.ShapeDtypeStruct((B, 1, C * S), jnp.float32),
        grid_spec=pltpu.PrefetchScalarGridSpec(
            num_scalar_prefetch=0,
            grid=(B, n_k),
            in_specs=[
                pl.BlockSpec((1, C * S, ts, 128), lambda b, k: (b, 0, k, 0)),
                pl.BlockSpec((1, S, ts, 128), lambda b, k: (b, 0, k, 0)),
            ],
            out_specs=pl.BlockSpec((1, 1, C * S), lambda b, k: (b, 0, 0)),
            scratch_shapes=[pltpu.VMEM((C * S, ts, 128), jnp.float32)],
        ),
        compiler_params=pltpu.CompilerParams(
            dimension_semantics=("parallel", "arbitrary")),
    )(preds_k, labels_k)                                    # (B, 1, 9)

    # Tiny finalization in glue: M[b, p, s] -> per-speaker min over label source p -> mean.
    m = m_flat.reshape(B, NUM_SPK, NUM_SPK)
    return jnp.mean(jnp.min(m, axis=1))


def pit_loss_ref(preds, labels):
    """Pure-JAX reference mirroring the PyTorch forward (full 6-permutation loop)."""
    w = jnp.asarray(CLASS_WEIGHTS, dtype=preds.dtype)
    logsm = jax.nn.log_softmax(preds, axis=2)               # (B, T, C, S)
    losses = []
    for perm in PERMS:
        lab = labels[..., jnp.asarray(perm)]                # (B, T, S)
        nll = -jnp.take_along_axis(logsm, lab[:, :, None, :], axis=2)[:, :, 0, :]
        losses.append(jnp.mean(w[lab] * nll, axis=1))       # (B, S)
    losses = jnp.stack(losses, axis=1)                      # (B, 6, S)
    return jnp.mean(jnp.min(losses, axis=1))


if __name__ == "__main__":
    # Small but representative: exercises multi-tile accumulation (T > time_tile) and the
    # ragged-last-tile mask (T not a multiple of the tile).
    B, T = 2, 1500
    key = jax.random.PRNGKey(0)
    kp, kl = jax.random.split(key)
    preds = jax.random.normal(kp, (B, T, NUM_CLASSES, NUM_SPK), dtype=jnp.float32)
    labels = jax.random.randint(kl, (B, T, NUM_SPK), 0, NUM_CLASSES, dtype=jnp.int32)

    out = jax.block_until_ready(pit_loss(preds, labels))
    ref = jax.block_until_ready(pit_loss_ref(preds, labels))
    assert jnp.allclose(out, ref, atol=1e-5, rtol=1e-5), (out, ref)
    print("KERNEL_OK")
</pallas_src>

<mosaic_0001>
module attributes {stable_mosaic.version = 11 : i64} {
  func.func @_pit_kernel(%arg0: i32, %arg1: i32, %arg2: memref<1x9x8x128xf32, #tpu.memory_space<vmem>>, %arg3: memref<1x3x8x128xi32, #tpu.memory_space<vmem>>, %arg4: memref<1x1x9xf32, #tpu.memory_space<vmem>>, %arg5: memref<9x8x128xf32, #tpu.memory_space<vmem>>) attributes {dimension_semantics = [#tpu.dimension_semantics<parallel>, #tpu.dimension_semantics<arbitrary>], iteration_bounds = array<i64: 2, 2>, scalar_prefetch = 0 : i64, scratch_operands = 1 : i64, tpu.core_type = #tpu.core_type<tc>, window_params = [{transform_indices = @transform_0, window_bounds = array<i64: 1, 9, 8, 128>}, {transform_indices = @transform_1, window_bounds = array<i64: 1, 3, 8, 128>}, {transform_indices = @transform_2, window_bounds = array<i64: 1, 1, 9>}]} {
    %c0_i32 = arith.constant 0 : i32
    %0 = arith.cmpi eq, %arg1, %c0_i32 : i32
    %1 = arith.extui %0 : i1 to i32
    %c0_i32_0 = arith.constant 0 : i32
    %2 = arith.cmpi ne, %1, %c0_i32_0 : i32
    scf.if %2 {
      %cst_163 = arith.constant 0.000000e+00 : f32
      %270 = vector.broadcast %cst_163 : f32 to vector<9x8x128xf32>
      %c0_164 = arith.constant 0 : index
      %c0_165 = arith.constant 0 : index
      %c0_166 = arith.constant 0 : index
      %271 = vector.load %arg5[%c0_164, %c0_165, %c0_166] : memref<9x8x128xf32, #tpu.memory_space<vmem>>, vector<9x8x128xf32>
      tpu.vector_store %arg5[%c0_164, %c0_165, %c0_166], %270 {strides = array<i32>} : memref<9x8x128xf32, #tpu.memory_space<vmem>>, vector<9x8x128xf32>,
    } else {
    }
    %3 = tpu.iota {dimensions = array<i32: 0>} : vector<8x128xi32>
    %c128_i32 = arith.constant 128 : i32
    %4 = vector.broadcast %c128_i32 : i32 to vector<8x128xi32>
    %5 = arith.muli %3, %4 : vector<8x128xi32>
    %6 = tpu.iota {dimensions = array<i32: 1>} : vector<8x128xi32>
    %7 = arith.addi %5, %6 : vector<8x128xi32>
    %c1024_i32 = arith.constant 1024 : i32
    %8 = arith.muli %arg1, %c1024_i32 : i32
    %9 = vector.broadcast %8 : i32 to vector<8x128xi32>
    %10 = arith.addi %9, %7 : vector<8x128xi32>
    %c1500_i32 = arith.constant 1500 : i32
    %11 = vector.broadcast %c1500_i32 : i32 to vector<8x128xi32>
    %12 = arith.cmpi slt, %10, %11 : vector<8x128xi32>
    %13 = arith.extui %12 : vector<8x128xi1> to vector<8x128xi32>
    %14 = arith.sitofp %13 : vector<8x128xi32> to vector<8x128xf32>
    %c0 = arith.constant 0 : index
    %c0_1 = arith.constant 0 : index
    %c0_2 = arith.constant 0 : index
    %c0_3 = arith.constant 0 : index
    %15 = vector.load %arg2[%c0, %c0_1, %c0_2, %c0_3] : memref<1x9x8x128xf32, #tpu.memory_space<vmem>>, vector<1x1x8x128xf32>
    %16 = vector.shape_cast %15 : vector<1x1x8x128xf32> to vector<8x128xf32>
    %c0_4 = arith.constant 0 : index
    %c3 = arith.constant 3 : index
    %c0_5 = arith.constant 0 : index
    %c0_6 = arith.constant 0 : index
    %17 = vector.load %arg2[%c0_4, %c3, %c0_5, %c0_6] : memref<1x9x8x128xf32, #tpu.memory_space<vmem>>, vector<1x1x8x128xf32>
    %18 = vector.shape_cast %17 : vector<1x1x8x128xf32> to vector<8x128xf32>
    %c0_7 = arith.constant 0 : index
    %c6 = arith.constant 6 : index
    %c0_8 = arith.constant 0 : index
    %c0_9 = arith.constant 0 : index
    %19 = vector.load %arg2[%c0_7, %c6, %c0_8, %c0_9] : memref<1x9x8x128xf32, #tpu.memory_space<vmem>>, vector<1x1x8x128xf32>
    %20 = vector.shape_cast %19 : vector<1x1x8x128xf32> to vector<8x128xf32>
    %21 = arith.maximumf %16, %18 : vector<8x128xf32>
    %22 = arith.maximumf %21, %20 : vector<8x128xf32>
    %23 = arith.subf %16, %22 : vector<8x128xf32>
    %24 = math.exp %23 : vector<8x128xf32>
    %25 = arith.subf %18, %22 : vector<8x128xf32>
    %26 = math.exp %25 : vector<8x128xf32>
    %27 = arith.addf %24, %26 : vector<8x128xf32>
    %28 = arith.subf %20, %22 : vector<8x128xf32>
    %29 = math.exp %28 : vector<8x128xf32>
    %30 = arith.addf %27, %29 : vector<8x128xf32>
    %31 = math.log %30 : vector<8x128xf32>
    %32 = arith.addf %22, %31 : vector<8x128xf32>
    %c0_10 = arith.constant 0 : index
    %c0_11 = arith.constant 0 : index
    %c0_12 = arith.constant 0 : index
    %c0_13 = arith.constant 0 : index
    %33 = vector.load %arg3[%c0_10, %c0_11, %c0_12, %c0_13] : memref<1x3x8x128xi32, #tpu.memory_space<vmem>>, vector<1x1x8x128xi32>
    %34 = vector.shape_cast %33 : vector<1x1x8x128xi32> to vector<8x128xi32>
    %c0_i32_14 = arith.constant 0 : i32
    %35 = vector.broadcast %c0_i32_14 : i32 to vector<8x128xi32>
    %36 = arith.cmpi eq, %34, %35 : vector<8x128xi32>
    %c1_i32 = arith.constant 1 : i32
    %37 = vector.broadcast %c1_i32 : i32 to vector<8x128xi32>
    %38 = arith.cmpi eq, %34, %37 : vector<8x128xi32>
    %cst = arith.constant 1.000000e+00 : f32
    %cst_15 = arith.constant 1.000000e+00 : f32
    %39 = vector.broadcast %cst : f32 to vector<8x128xf32>
    %40 = vector.broadcast %cst_15 : f32 to vector<8x128xf32>
    %41 = arith.select %38, %39, %40 : vector<8x128xi1>, vector<8x128xf32>
    %cst_16 = arith.constant 1.600000e+00 : f32
    %42 = vector.broadcast %cst_16 : f32 to vector<8x128xf32>
    %43 = arith.select %36, %42, %41 : vector<8x128xi1>, vector<8x128xf32>
    %44 = arith.mulf %43, %14 : vector<8x128xf32>
    %45 = arith.select %38, %18, %20 : vector<8x128xi1>, vector<8x128xf32>
    %46 = arith.select %36, %16, %45 : vector<8x128xi1>, vector<8x128xf32>
    %47 = arith.subf %46, %32 : vector<8x128xf32>
    %c0_17 = arith.constant 0 : index
    %c0_18 = arith.constant 0 : index
    %c0_19 = arith.constant 0 : index
    %48 = vector.load %arg5[%c0_17, %c0_18, %c0_19] : memref<9x8x128xf32, #tpu.memory_space<vmem>>, vector<1x8x128xf32>
    %49 = vector.shape_cast %48 : vector<1x8x128xf32> to vector<8x128xf32>
    %50 = arith.mulf %44, %47 : vector<8x128xf32>
    %51 = arith.subf %49, %50 : vector<8x128xf32>
    %c0_20 = arith.constant 0 : index
    %c0_21 = arith.constant 0 : index
    %c0_22 = arith.constant 0 : index
    %52 = vector.load %arg5[%c0_20, %c0_21, %c0_22] : memref<9x8x128xf32, #tpu.memory_space<vmem>>, vector<1x8x128xf32>
    %53 = vector.shape_cast %52 : vector<1x8x128xf32> to vector<8x128xf32>
    %54 = vector.shape_cast %51 : vector<8x128xf32> to vector<1x8x128xf32>
    tpu.vector_store %arg5[%c0_20, %c0_21, %c0_22], %54 {strides = array<i32>} : memref<9x8x128xf32, #tpu.memory_space<vmem>>, vector<1x8x128xf32>,
    %c0_23 = arith.constant 0 : index
    %c1 = arith.constant 1 : index
    %c0_24 = arith.constant 0 : index
    %c0_25 = arith.constant 0 : index
    %55 = vector.load %arg3[%c0_23, %c1, %c0_24, %c0_25] : memref<1x3x8x128xi32, #tpu.memory_space<vmem>>, vector<1x1x8x128xi32>
    %56 = vector.shape_cast %55 : vector<1x1x8x128xi32> to vector<8x128xi32>
    %c0_i32_26 = arith.constant 0 : i32
    %57 = vector.broadcast %c0_i32_26 : i32 to vector<8x128xi32>
    %58 = arith.cmpi eq, %56, %57 : vector<8x128xi32>
    %c1_i32_27 = arith.constant 1 : i32
    %59 = vector.broadcast %c1_i32_27 : i32 to vector<8x128xi32>
    %60 = arith.cmpi eq, %56, %59 : vector<8x128xi32>
    %cst_28 = arith.constant 1.000000e+00 : f32
    %cst_29 = arith.constant 1.000000e+00 : f32
    %61 = vector.broadcast %cst_28 : f32 to vector<8x128xf32>
    %62 = vector.broadcast %cst_29 : f32 to vector<8x128xf32>
    %63 = arith.select %60, %61, %62 : vector<8x128xi1>, vector<8x128xf32>
    %cst_30 = arith.constant 1.600000e+00 : f32
    %64 = vector.broadcast %cst_30 : f32 to vector<8x128xf32>
    %65 = arith.select %58, %64, %63 : vector<8x128xi1>, vector<8x128xf32>
    %66 = arith.mulf %65, %14 : vector<8x128xf32>
    %67 = arith.select %60, %18, %20 : vector<8x128xi1>, vector<8x128xf32>
    %68 = arith.select %58, %16, %67 : vector<8x128xi1>, vector<8x128xf32>
    %69 = arith.subf %68, %32 : vector<8x128xf32>
    %c3_31 = arith.constant 3 : index
    %c0_32 = arith.constant 0 : index
    %c0_33 = arith.constant 0 : index
    %70 = vector.load %arg5[%c3_31, %c0_32, %c0_33] : memref<9x8x128xf32, #tpu.memory_space<vmem>>, vector<1x8x128xf32>
    %71 = vector.shape_cast %70 : vector<1x8x128xf32> to vector<8x128xf32>
    %72 = arith.mulf %66, %69 : vector<8x128xf32>
    %73 = arith.subf %71, %72 : vector<8x128xf32>
    %c3_34 = arith.constant 3 : index
    %c0_35 = arith.constant 0 : index
    %c0_36 = arith.constant 0 : index
    %74 = vector.load %arg5[%c3_34, %c0_35, %c0_36] : memref<9x8x128xf32, #tpu.memory_space<vmem>>, vector<1x8x128xf32>
    %75 = vector.shape_cast %74 : vector<1x8x128xf32> to vector<8x128xf32>
    %76 = vector.shape_cast %73 : vector<8x128xf32> to vector<1x8x128xf32>
    tpu.vector_store %arg5[%c3_34, %c0_35, %c0_36], %76 {strides = array<i32>} : memref<9x8x128xf32, #tpu.memory_space<vmem>>, vector<1x8x128xf32>,
    %c0_37 = arith.constant 0 : index
    %c2 = arith.constant 2 : index
    %c0_38 = arith.constant 0 : index
    %c0_39 = arith.constant 0 : index
    %77 = vector.load %arg3[%c0_37, %c2, %c0_38, %c0_39] : memref<1x3x8x128xi32, #tpu.memory_space<vmem>>, vector<1x1x8x128xi32>
    %78 = vector.shape_cast %77 : vector<1x1x8x128xi32> to vector<8x128xi32>
    %c0_i32_40 = arith.constant 0 : i32
    %79 = vector.broadcast %c0_i32_40 : i32 to vector<8x128xi32>
    %80 = arith.cmpi eq, %78, %79 : vector<8x128xi32>
    %c1_i32_41 = arith.constant 1 : i32
    %81 = vector.broadcast %c1_i32_41 : i32 to vector<8x128xi32>
    %82 = arith.cmpi eq, %78, %81 : vector<8x128xi32>
    %cst_42 = arith.constant 1.000000e+00 : f32
    %cst_43 = arith.constant 1.000000e+00 : f32
    %83 = vector.broadcast %cst_42 : f32 to vector<8x128xf32>
    %84 = vector.broadcast %cst_43 : f32 to vector<8x128xf32>
    %85 = arith.select %82, %83, %84 : vector<8x128xi1>, vector<8x128xf32>
    %cst_44 = arith.constant 1.600000e+00 : f32
    %86 = vector.broadcast %cst_44 : f32 to vector<8x128xf32>
    %87 = arith.select %80, %86, %85 : vector<8x128xi1>, vector<8x128xf32>
    %88 = arith.mulf %87, %14 : vector<8x128xf32>
    %89 = arith.select %82, %18, %20 : vector<8x128xi1>, vector<8x128xf32>
    %90 = arith.select %80, %16, %89 : vector<8x128xi1>, vector<8x128xf32>
    %91 = arith.subf %90, %32 : vector<8x128xf32>
    %c6_45 = arith.constant 6 : index
    %c0_46 = arith.constant 0 : index
    %c0_47 = arith.constant 0 : index
    %92 = vector.load %arg5[%c6_45, %c0_46, %c0_47] : memref<9x8x128xf32, #tpu.memory_space<vmem>>, vector<1x8x128xf32>
    %93 = vector.shape_cast %92 : vector<1x8x128xf32> to vector<8x128xf32>
    %94 = arith.mulf %88, %91 : vector<8x128xf32>
    %95 = arith.subf %93, %94 : vector<8x128xf32>
    %c6_48 = arith.constant 6 : index
    %c0_49 = arith.constant 0 : index
    %c0_50 = arith.constant 0 : index
    %96 = vector.load %arg5[%c6_48, %c0_49, %c0_50] : memref<9x8x128xf32, #tpu.memory_space<vmem>>, vector<1x8x128xf32>
    %97 = vector.shape_cast %96 : vector<1x8x128xf32> to vector<8x128xf32>
    %98 = vector.shape_cast %95 : vector<8x128xf32> to vector<1x8x128xf32>
    tpu.vector_store %arg5[%c6_48, %c0_49, %c0_50], %98 {strides = array<i32>} : memref<9x8x128xf32, #tpu.memory_space<vmem>>, vector<1x8x128xf32>,
    %c0_51 = arith.constant 0 : index
    %c1_52 = arith.constant 1 : index
    %c0_53 = arith.constant 0 : index
    %c0_54 = arith.constant 0 : index
    %99 = vector.load %arg2[%c0_51, %c1_52, %c0_53, %c0_54] : memref<1x9x8x128xf32, #tpu.memory_space<vmem>>, vector<1x1x8x128xf32>
    %100 = vector.shape_cast %99 : vector<1x1x8x128xf32> to vector<8x128xf32>
    %c0_55 = arith.constant 0 : index
    %c4 = arith.constant 4 : index
    %c0_56 = arith.constant 0 : index
    %c0_57 = arith.constant 0 : index
    %101 = vector.load %arg2[%c0_55, %c4, %c0_56, %c0_57] : memref<1x9x8x128xf32, #tpu.memory_space<vmem>>, vector<1x1x8x128xf32>
    %102 = vector.shape_cast %101 : vector<1x1x8x128xf32> to vector<8x128xf32>
    %c0_58 = arith.constant 0 : index
    %c7 = arith.constant 7 : index
    %c0_59 = arith.constant 0 : index
    %c0_60 = arith.constant 0 : index
    %103 = vector.load %arg2[%c0_58, %c7, %c0_59, %c0_60] : memref<1x9x8x128xf32, #tpu.memory_space<vmem>>, vector<1x1x8x128xf32>
    %104 = vector.shape_cast %103 : vector<1x1x8x128xf32> to vector<8x128xf32>
    %105 = arith.maximumf %100, %102 : vector<8x128xf32>
    %106 = arith.maximumf %105, %104 : vector<8x128xf32>
    %107 = arith.subf %100, %106 : vector<8x128xf32>
    %108 = math.exp %107 : vector<8x128xf32>
    %109 = arith.subf %102, %106 : vector<8x128xf32>
    %110 = math.exp %109 : vector<8x128xf32>
    %111 = arith.addf %108, %110 : vector<8x128xf32>
    %112 = arith.subf %104, %106 : vector<8x128xf32>
    %113 = math.exp %112 : vector<8x128xf32>
    %114 = arith.addf %111, %113 : vector<8x128xf32>
    %115 = math.log %114 : vector<8x128xf32>
    %116 = arith.addf %106, %115 : vector<8x128xf32>
    %c0_61 = arith.constant 0 : index
    %c0_62 = arith.constant 0 : index
    %c0_63 = arith.constant 0 : index
    %c0_64 = arith.constant 0 : index
    %117 = vector.load %arg3[%c0_61, %c0_62, %c0_63, %c0_64] : memref<1x3x8x128xi32, #tpu.memory_space<vmem>>, vector<1x1x8x128xi32>
    %118 = vector.shape_cast %117 : vector<1x1x8x128xi32> to vector<8x128xi32>
    %c0_i32_65 = arith.constant 0 : i32
    %119 = vector.broadcast %c0_i32_65 : i32 to vector<8x128xi32>
    %120 = arith.cmpi eq, %118, %119 : vector<8x128xi32>
    %c1_i32_66 = arith.constant 1 : i32
    %121 = vector.broadcast %c1_i32_66 : i32 to vector<8x128xi32>
    %122 = arith.cmpi eq, %118, %121 : vector<8x128xi32>
    %cst_67 = arith.constant 1.000000e+00 : f32
    %cst_68 = arith.constant 1.000000e+00 : f32
    %123 = vector.broadcast %cst_67 : f32 to vector<8x128xf32>
    %124 = vector.broadcast %cst_68 : f32 to vector<8x128xf32>
    %125 = arith.select %122, %123, %124 : vector<8x128xi1>, vector<8x128xf32>
    %cst_69 = arith.constant 1.600000e+00 : f32
    %126 = vector.broadcast %cst_69 : f32 to vector<8x128xf32>
    %127 = arith.select %120, %126, %125 : vector<8x128xi1>, vector<8x128xf32>
    %128 = arith.mulf %127, %14 : vector<8x128xf32>
    %129 = arith.select %122, %102, %104 : vector<8x128xi1>, vector<8x128xf32>
    %130 = arith.select %120, %100, %129 : vector<8x128xi1>, vector<8x128xf32>
    %131 = arith.subf %130, %116 : vector<8x128xf32>
    %c1_70 = arith.constant 1 : index
    %c0_71 = arith.constant 0 : index
    %c0_72 = arith.constant 0 : index
    %132 = vector.load %arg5[%c1_70, %c0_71, %c0_72] : memref<9x8x128xf32, #tpu.memory_space<vmem>>, vector<1x8x128xf32>
    %133 = vector.shape_cast %132 : vector<1x8x128xf32> to vector<8x128xf32>
    %134 = arith.mulf %128, %131 : vector<8x128xf32>
    %135 = arith.subf %133, %134 : vector<8x128xf32>
    %c1_73 = arith.constant 1 : index
    %c0_74 = arith.constant 0 : index
    %c0_75 = arith.constant 0 : index
    %136 = vector.load %arg5[%c1_73, %c0_74, %c0_75] : memref<9x8x128xf32, #tpu.memory_space<vmem>>, vector<1x8x128xf32>
    %137 = vector.shape_cast %136 : vector<1x8x128xf32> to vector<8x128xf32>
    %138 = vector.shape_cast %135 : vector<8x128xf32> to vector<1x8x128xf32>
    tpu.vector_store %arg5[%c1_73, %c0_74, %c0_75], %138 {strides = array<i32>} : memref<9x8x128xf32, #tpu.memory_space<vmem>>, vector<1x8x128xf32>,
    %c0_76 = arith.constant 0 : index
    %c1_77 = arith.constant 1 : index
    %c0_78 = arith.constant 0 : index
    %c0_79 = arith.constant 0 : index
    %139 = vector.load %arg3[%c0_76, %c1_77, %c0_78, %c0_79] : memref<1x3x8x128xi32, #tpu.memory_space<vmem>>, vector<1x1x8x128xi32>
    %140 = vector.shape_cast %139 : vector<1x1x8x128xi32> to vector<8x128xi32>
    %c0_i32_80 = arith.constant 0 : i32
    %141 = vector.broadcast %c0_i32_80 : i32 to vector<8x128xi32>
    %142 = arith.cmpi eq, %140, %141 : vector<8x128xi32>
    %c1_i32_81 = arith.constant 1 : i32
    %143 = vector.broadcast %c1_i32_81 : i32 to vector<8x128xi32>
    %144 = arith.cmpi eq, %140, %143 : vector<8x128xi32>
    %cst_82 = arith.constant 1.000000e+00 : f32
    %cst_83 = arith.constant 1.000000e+00 : f32
    %145 = vector.broadcast %cst_82 : f32 to vector<8x128xf32>
    %146 = vector.broadcast %cst_83 : f32 to vector<8x128xf32>
    %147 = arith.select %144, %145, %146 : vector<8x128xi1>, vector<8x128xf32>
    %cst_84 = arith.constant 1.600000e+00 : f32
    %148 = vector.broadcast %cst_84 : f32 to vector<8x128xf32>
    %149 = arith.select %142, %148, %147 : vector<8x128xi1>, vector<8x128xf32>
    %150 = arith.mulf %149, %14 : vector<8x128xf32>
    %151 = arith.select %144, %102, %104 : vector<8x128xi1>, vector<8x128xf32>
    %152 = arith.select %142, %100, %151 : vector<8x128xi1>, vector<8x128xf32>
    %153 = arith.subf %152, %116 : vector<8x128xf32>
    %c4_85 = arith.constant 4 : index
    %c0_86 = arith.constant 0 : index
    %c0_87 = arith.constant 0 : index
    %154 = vector.load %arg5[%c4_85, %c0_86, %c0_87] : memref<9x8x128xf32, #tpu.memory_space<vmem>>, vector<1x8x128xf32>
    %155 = vector.shape_cast %154 : vector<1x8x128xf32> to vector<8x128xf32>
    %156 = arith.mulf %150, %153 : vector<8x128xf32>
    %157 = arith.subf %155, %156 : vector<8x128xf32>
    %c4_88 = arith.constant 4 : index
    %c0_89 = arith.constant 0 : index
    %c0_90 = arith.constant 0 : index
    %158 = vector.load %arg5[%c4_88, %c0_89, %c0_90] : memref<9x8x128xf32, #tpu.memory_space<vmem>>, vector<1x8x128xf32>
    %159 = vector.shape_cast %158 : vector<1x8x128xf32> to vector<8x128xf32>
    %160 = vector.shape_cast %157 : vector<8x128xf32> to vector<1x8x128xf32>
    tpu.vector_store %arg5[%c4_88, %c0_89, %c0_90], %160 {strides = array<i32>} : memref<9x8x128xf32, #tpu.memory_space<vmem>>, vector<1x8x128xf32>,
    %c0_91 = arith.constant 0 : index
    %c2_92 = arith.constant 2 : index
    %c0_93 = arith.constant 0 : index
    %c0_94 = arith.constant 0 : index
    %161 = vector.load %arg3[%c0_91, %c2_92, %c0_93, %c0_94] : memref<1x3x8x128xi32, #tpu.memory_space<vmem>>, vector<1x1x8x128xi32>
    %162 = vector.shape_cast %161 : vector<1x1x8x128xi32> to vector<8x128xi32>
    %c0_i32_95 = arith.constant 0 : i32
    %163 = vector.broadcast %c0_i32_95 : i32 to vector<8x128xi32>
    %164 = arith.cmpi eq, %162, %163 : vector<8x128xi32>
    %c1_i32_96 = arith.constant 1 : i32
    %165 = vector.broadcast %c1_i32_96 : i32 to vector<8x128xi32>
    %166 = arith.cmpi eq, %162, %165 : vector<8x128xi32>
    %cst_97 = arith.constant 1.000000e+00 : f32
    %cst_98 = arith.constant 1.000000e+00 : f32
    %167 = vector.broadcast %cst_97 : f32 to vector<8x128xf32>
    %168 = vector.broadcast %cst_98 : f32 to vector<8x128xf32>
    %169 = arith.select %166, %167, %168 : vector<8x128xi1>, vector<8x128xf32>
    %cst_99 = arith.constant 1.600000e+00 : f32
    %170 = vector.broadcast %cst_99 : f32 to vector<8x128xf32>
    %171 = arith.select %164, %170, %169 : vector<8x128xi1>, vector<8x128xf32>
    %172 = arith.mulf %171, %14 : vector<8x128xf32>
    %173 = arith.select %166, %102, %104 : vector<8x128xi1>, vector<8x128xf32>
    %174 = arith.select %164, %100, %173 : vector<8x128xi1>, vector<8x128xf32>
    %175 = arith.subf %174, %116 : vector<8x128xf32>
    %c7_100 = arith.constant 7 : index
    %c0_101 = arith.constant 0 : index
    %c0_102 = arith.constant 0 : index
    %176 = vector.load %arg5[%c7_100, %c0_101, %c0_102] : memref<9x8x128xf32, #tpu.memory_space<vmem>>, vector<1x8x128xf32>
    %177 = vector.shape_cast %176 : vector<1x8x128xf32> to vector<8x128xf32>
    %178 = arith.mulf %172, %175 : vector<8x128xf32>
    %179 = arith.subf %177, %178 : vector<8x128xf32>
    %c7_103 = arith.constant 7 : index
    %c0_104 = arith.constant 0 : index
    %c0_105 = arith.constant 0 : index
    %180 = vector.load %arg5[%c7_103, %c0_104, %c0_105] : memref<9x8x128xf32, #tpu.memory_space<vmem>>, vector<1x8x128xf32>
    %181 = vector.shape_cast %180 : vector<1x8x128xf32> to vector<8x128xf32>
    %182 = vector.shape_cast %179 : vector<8x128xf32> to vector<1x8x128xf32>
    tpu.vector_store %arg5[%c7_103, %c0_104, %c0_105], %182 {strides = array<i32>} : memref<9x8x128xf32, #tpu.memory_space<vmem>>, vector<1x8x128xf32>,
    %c0_106 = arith.constant 0 : index
    %c2_107 = arith.constant 2 : index
    %c0_108 = arith.constant 0 : index
    %c0_109 = arith.constant 0 : index
    %183 = vector.load %arg2[%c0_106, %c2_107, %c0_108, %c0_109] : memref<1x9x8x128xf32, #tpu.memory_space<vmem>>, vector<1x1x8x128xf32>
    %184 = vector.shape_cast %183 : vector<1x1x8x128xf32> to vector<8x128xf32>
    %c0_110 = arith.constant 0 : index
    %c5 = arith.constant 5 : index
    %c0_111 = arith.constant 0 : index
    %c0_112 = arith.constant 0 : index
    %185 = vector.load %arg2[%c0_110, %c5, %c0_111, %c0_112] : memref<1x9x8x128xf32, #tpu.memory_space<vmem>>, vector<1x1x8x128xf32>
    %186 = vector.shape_cast %185 : vector<1x1x8x128xf32> to vector<8x128xf32>
    %c0_113 = arith.constant 0 : index
    %c8 = arith.constant 8 : index
    %c0_114 = arith.constant 0 : index
    %c0_115 = arith.constant 0 : index
    %187 = vector.load %arg2[%c0_113, %c8, %c0_114, %c0_115] : memref<1x9x8x128xf32, #tpu.memory_space<vmem>>, vector<1x1x8x128xf32>
    %188 = vector.shape_cast %187 : vector<1x1x8x128xf32> to vector<8x128xf32>
    %189 = arith.maximumf %184, %186 : vector<8x128xf32>
    %190 = arith.maximumf %189, %188 : vector<8x128xf32>
    %191 = arith.subf %184, %190 : vector<8x128xf32>
    %192 = math.exp %191 : vector<8x128xf32>
    %193 = arith.subf %186, %190 : vector<8x128xf32>
    %194 = math.exp %193 : vector<8x128xf32>
    %195 = arith.addf %192, %194 : vector<8x128xf32>
    %196 = arith.subf %188, %190 : vector<8x128xf32>
    %197 = math.exp %196 : vector<8x128xf32>
    %198 = arith.addf %195, %197 : vector<8x128xf32>
    %199 = math.log %198 : vector<8x128xf32>
    %200 = arith.addf %190, %199 : vector<8x128xf32>
    %c0_116 = arith.constant 0 : index
    %c0_117 = arith.constant 0 : index
    %c0_118 = arith.constant 0 : index
    %c0_119 = arith.constant 0 : index
    %201 = vector.load %arg3[%c0_116, %c0_117, %c0_118, %c0_119] : memref<1x3x8x128xi32, #tpu.memory_space<vmem>>, vector<1x1x8x128xi32>
    %202 = vector.shape_cast %201 : vector<1x1x8x128xi32> to vector<8x128xi32>
    %c0_i32_120 = arith.constant 0 : i32
    %203 = vector.broadcast %c0_i32_120 : i32 to vector<8x128xi32>
    %204 = arith.cmpi eq, %202, %203 : vector<8x128xi32>
    %c1_i32_121 = arith.constant 1 : i32
    %205 = vector.broadcast %c1_i32_121 : i32 to vector<8x128xi32>
    %206 = arith.cmpi eq, %202, %205 : vector<8x128xi32>
    %cst_122 = arith.constant 1.000000e+00 : f32
    %cst_123 = arith.constant 1.000000e+00 : f32
    %207 = vector.broadcast %cst_122 : f32 to vector<8x128xf32>
    %208 = vector.broadcast %cst_123 : f32 to vector<8x128xf32>
    %209 = arith.select %206, %207, %208 : vector<8x128xi1>, vector<8x128xf32>
    %cst_124 = arith.constant 1.600000e+00 : f32
    %210 = vector.broadcast %cst_124 : f32 to vector<8x128xf32>
    %211 = arith.select %204, %210, %209 : vector<8x128xi1>, vector<8x128xf32>
    %212 = arith.mulf %211, %14 : vector<8x128xf32>
    %213 = arith.select %206, %186, %188 : vector<8x128xi1>, vector<8x128xf32>
    %214 = arith.select %204, %184, %213 : vector<8x128xi1>, vector<8x128xf32>
    %215 = arith.subf %214, %200 : vector<8x128xf32>
    %c2_125 = arith.constant 2 : index
    %c0_126 = arith.constant 0 : index
    %c0_127 = arith.constant 0 : index
    %216 = vector.load %arg5[%c2_125, %c0_126, %c0_127] : memref<9x8x128xf32, #tpu.memory_space<vmem>>, vector<1x8x128xf32>
    %217 = vector.shape_cast %216 : vector<1x8x128xf32> to vector<8x128xf32>
    %218 = arith.mulf %212, %215 : vector<8x128xf32>
    %219 = arith.subf %217, %218 : vector<8x128xf32>
    %c2_128 = arith.constant 2 : index
    %c0_129 = arith.constant 0 : index
    %c0_130 = arith.constant 0 : index
    %220 = vector.load %arg5[%c2_128, %c0_129, %c0_130] : memref<9x8x128xf32, #tpu.memory_space<vmem>>, vector<1x8x128xf32>
    %221 = vector.shape_cast %220 : vector<1x8x128xf32> to vector<8x128xf32>
    %222 = vector.shape_cast %219 : vector<8x128xf32> to vector<1x8x128xf32>
    tpu.vector_store %arg5[%c2_128, %c0_129, %c0_130], %222 {strides = array<i32>} : memref<9x8x128xf32, #tpu.memory_space<vmem>>, vector<1x8x128xf32>,
    %c0_131 = arith.constant 0 : index
    %c1_132 = arith.constant 1 : index
    %c0_133 = arith.constant 0 : index
    %c0_134 = arith.constant 0 : index
    %223 = vector.load %arg3[%c0_131, %c1_132, %c0_133, %c0_134] : memref<1x3x8x128xi32, #tpu.memory_space<vmem>>, vector<1x1x8x128xi32>
    %224 = vector.shape_cast %223 : vector<1x1x8x128xi32> to vector<8x128xi32>
    %c0_i32_135 = arith.constant 0 : i32
    %225 = vector.broadcast %c0_i32_135 : i32 to vector<8x128xi32>
    %226 = arith.cmpi eq, %224, %225 : vector<8x128xi32>
    %c1_i32_136 = arith.constant 1 : i32
    %227 = vector.broadcast %c1_i32_136 : i32 to vector<8x128xi32>
    %228 = arith.cmpi eq, %224, %227 : vector<8x128xi32>
    %cst_137 = arith.constant 1.000000e+00 : f32
    %cst_138 = arith.constant 1.000000e+00 : f32
    %229 = vector.broadcast %cst_137 : f32 to vector<8x128xf32>
    %230 = vector.broadcast %cst_138 : f32 to vector<8x128xf32>
    %231 = arith.select %228, %229, %230 : vector<8x128xi1>, vector<8x128xf32>
    %cst_139 = arith.constant 1.600000e+00 : f32
    %232 = vector.broadcast %cst_139 : f32 to vector<8x128xf32>
    %233 = arith.select %226, %232, %231 : vector<8x128xi1>, vector<8x128xf32>
    %234 = arith.mulf %233, %14 : vector<8x128xf32>
    %235 = arith.select %228, %186, %188 : vector<8x128xi1>, vector<8x128xf32>
    %236 = arith.select %226, %184, %235 : vector<8x128xi1>, vector<8x128xf32>
    %237 = arith.subf %236, %200 : vector<8x128xf32>
    %c5_140 = arith.constant 5 : index
    %c0_141 = arith.constant 0 : index
    %c0_142 = arith.constant 0 : index
    %238 = vector.load %arg5[%c5_140, %c0_141, %c0_142] : memref<9x8x128xf32, #tpu.memory_space<vmem>>, vector<1x8x128xf32>
    %239 = vector.shape_cast %238 : vector<1x8x128xf32> to vector<8x128xf32>
    %240 = arith.mulf %234, %237 : vector<8x128xf32>
    %241 = arith.subf %239, %240 : vector<8x128xf32>
    %c5_143 = arith.constant 5 : index
    %c0_144 = arith.constant 0 : index
    %c0_145 = arith.constant 0 : index
    %242 = vector.load %arg5[%c5_143, %c0_144, %c0_145] : memref<9x8x128xf32, #tpu.memory_space<vmem>>, vector<1x8x128xf32>
    %243 = vector.shape_cast %242 : vector<1x8x128xf32> to vector<8x128xf32>
    %244 = vector.shape_cast %241 : vector<8x128xf32> to vector<1x8x128xf32>
    tpu.vector_store %arg5[%c5_143, %c0_144, %c0_145], %244 {strides = array<i32>} : memref<9x8x128xf32, #tpu.memory_space<vmem>>, vector<1x8x128xf32>,
    %c0_146 = arith.constant 0 : index
    %c2_147 = arith.constant 2 : index
    %c0_148 = arith.constant 0 : index
    %c0_149 = arith.constant 0 : index
    %245 = vector.load %arg3[%c0_146, %c2_147, %c0_148, %c0_149] : memref<1x3x8x128xi32, #tpu.memory_space<vmem>>, vector<1x1x8x128xi32>
    %246 = vector.shape_cast %245 : vector<1x1x8x128xi32> to vector<8x128xi32>
    %c0_i32_150 = arith.constant 0 : i32
    %247 = vector.broadcast %c0_i32_150 : i32 to vector<8x128xi32>
    %248 = arith.cmpi eq, %246, %247 : vector<8x128xi32>
    %c1_i32_151 = arith.constant 1 : i32
    %249 = vector.broadcast %c1_i32_151 : i32 to vector<8x128xi32>
    %250 = arith.cmpi eq, %246, %249 : vector<8x128xi32>
    %cst_152 = arith.constant 1.000000e+00 : f32
    %cst_153 = arith.constant 1.000000e+00 : f32
    %251 = vector.broadcast %cst_152 : f32 to vector<8x128xf32>
    %252 = vector.broadcast %cst_153 : f32 to vector<8x128xf32>
    %253 = arith.select %250, %251, %252 : vector<8x128xi1>, vector<8x128xf32>
    %cst_154 = arith.constant 1.600000e+00 : f32
    %254 = vector.broadcast %cst_154 : f32 to vector<8x128xf32>
    %255 = arith.select %248, %254, %253 : vector<8x128xi1>, vector<8x128xf32>
    %256 = arith.mulf %255, %14 : vector<8x128xf32>
    %257 = arith.select %250, %186, %188 : vector<8x128xi1>, vector<8x128xf32>
    %258 = arith.select %248, %184, %257 : vector<8x128xi1>, vector<8x128xf32>
    %259 = arith.subf %258, %200 : vector<8x128xf32>
    %c8_155 = arith.constant 8 : index
    %c0_156 = arith.constant 0 : index
    %c0_157 = arith.constant 0 : index
    %260 = vector.load %arg5[%c8_155, %c0_156, %c0_157] : memref<9x8x128xf32, #tpu.memory_space<vmem>>, vector<1x8x128xf32>
    %261 = vector.shape_cast %260 : vector<1x8x128xf32> to vector<8x128xf32>
    %262 = arith.mulf %256, %259 : vector<8x128xf32>
    %263 = arith.subf %261, %262 : vector<8x128xf32>
    %c8_158 = arith.constant 8 : index
    %c0_159 = arith.constant 0 : index
    %c0_160 = arith.constant 0 : index
    %264 = vector.load %arg5[%c8_158, %c0_159, %c0_160] : memref<9x8x128xf32, #tpu.memory_space<vmem>>, vector<1x8x128xf32>
    %265 = vector.shape_cast %264 : vector<1x8x128xf32> to vector<8x128xf32>
    %266 = vector.shape_cast %263 : vector<8x128xf32> to vector<1x8x128xf32>
    tpu.vector_store %arg5[%c8_158, %c0_159, %c0_160], %266 {strides = array<i32>} : memref<9x8x128xf32, #tpu.memory_space<vmem>>, vector<1x8x128xf32>,
    %c1_i32_161 = arith.constant 1 : i32
    %267 = arith.cmpi eq, %arg1, %c1_i32_161 : i32
    %268 = arith.extui %267 : i1 to i32
    %c0_i32_162 = arith.constant 0 : i32
    %269 = arith.cmpi ne, %268, %c0_i32_162 : i32
    scf.if %269 {
      %c0_163 = arith.constant 0 : index
      %c0_164 = arith.constant 0 : index
      %c0_165 = arith.constant 0 : index
      %270 = vector.load %arg5[%c0_163, %c0_164, %c0_165] : memref<9x8x128xf32, #tpu.memory_space<vmem>>, vector<9x8x128xf32>
      %cst_166 = arith.constant dense<0.000000e+00> : vector<9x8xf32>
      %271 = vector.multi_reduction <add>, %270, %cst_166 [2] : vector<9x8x128xf32> to vector<9x8xf32>
      %cst_167 = arith.constant dense<0.000000e+00> : vector<9xf32>
      %272 = vector.multi_reduction <add>, %271, %cst_167 [1] : vector<9x8xf32> to vector<9xf32>
      %cst_168 = arith.constant 6.66666659E-4 : f32
      %273 = vector.broadcast %cst_168 : f32 to vector<9xf32>
      %274 = arith.mulf %272, %273 : vector<9xf32>
      %275 = vector.shape_cast %274 : vector<9xf32> to vector<1x1x9xf32>
      %c0_169 = arith.constant 0 : index
      %c0_170 = arith.constant 0 : index
      %c0_171 = arith.constant 0 : index
      %276 = vector.load %arg4[%c0_169, %c0_170, %c0_171] : memref<1x1x9xf32, #tpu.memory_space<vmem>>, vector<1x1x9xf32>
      tpu.vector_store %arg4[%c0_169, %c0_170, %c0_171], %275 {strides = array<i32>} : memref<1x1x9xf32, #tpu.memory_space<vmem>>, vector<1x1x9xf32>,
    } else {
    }
    return
  }
  func.func @transform_0(%arg0: i32, %arg1: i32) -> (i32, i32, i32, i32) {
    %c0_i32 = arith.constant 0 : i32
    %c0_i32_0 = arith.constant 0 : i32
    %c0_i32_1 = arith.constant 0 : i32
    return %arg0, %c0_i32, %arg1, %c0_i32_0 : i32, i32, i32, i32
  }
  func.func @transform_1(%arg0: i32, %arg1: i32) -> (i32, i32, i32, i32) {
    %c0_i32 = arith.constant 0 : i32
    %c0_i32_0 = arith.constant 0 : i32
    %c0_i32_1 = arith.constant 0 : i32
    return %arg0, %c0_i32, %arg1, %c0_i32_0 : i32, i32, i32, i32
  }
  func.func @transform_2(%arg0: i32, %arg1: i32) -> (i32, i32, i32) {
    %c0_i32 = arith.constant 0 : i32
    %c0_i32_0 = arith.constant 0 : i32
    %c0_i32_1 = arith.constant 0 : i32
    return %arg0, %c0_i32, %c0_i32_0 : i32, i32, i32
  }
}

</mosaic_0001>

<bundles_post_ra>
// kernel: tpu_custom_call.1
= control target key start
LH: loop header
LB: loop body
LE: loop exit
PB: predicated region body
PF: predicated region fallthrough
CT: control target
= control target key end

     0   :  { %s1483_s0 = inlined_call_operand.hbm [shape: f32[2,9,16,128], index: 0, kind: input, shape index: {}]   ;;  %s1484_s1 = inlined_call_operand.hbm [shape: s32[2,3,16,128], index: 1, kind: input, shape index: {}]   ;;  %s1485_s2 = inlined_call_operand.hbm [shape: f32[2,1,9], index: 2, kind: output, shape index: {}]  }
   0x1   :  { %1492 = sst [smem:[#allocation18_spill]] %s1483_s0 }
   0x2   :  { %7 = vsyncpa [#allocation4], 0 }
   0x3   :  { %9 = vsyncpa [#allocation4 + $0x1], 0 }
   0x4   :  { %10 = vsyncpa [#allocation7], 0 }
   0x5   :  { %12 = vsyncpa [#allocation7 + $0x1], 0 }
   0x6   :  { %13 = vsyncpa [#allocation5], 0 }
   0x7   :  { %15 = vsyncpa [#allocation5 + $0x1], 0  ;;  %s1045_s9 = smov 0   ;;  %s1047_s10 = smov 0  }
   0x8   :  { %s1049_s11 = smov 0   ;;  %s1051_s12 = smov 0  }
   0x9   :  { %s1053_s13 = smov 0   ;;  %s1055_s14 = smov 0  }
   0xa   :  { %s1057_s15 = smov 0   ;;  %s1059_s16 = smov 0  }
   0xb   :  { %s1061_s17 = smov 0   ;;  %s1063_s18 = smov 0  }
   0xc   :  { %s1065_s19 = smov 0  }
   0xd LB: > { %1493 = sst [smem:[#allocation12_spill]] %s987_s11  ;;  %s662_s20 = sadd.s32 4294967295, %s1019_s19   ;;  %s1019_s19 = sphi %s1065_s19, %s21_s19   ;;  %s1015_s18 = sphi %s1063_s18, %s1522_s18   ;;  %s1011_s17 = sphi %s1061_s17, %s1521_s17   ;;  %s1007_s16 = sphi %s1059_s16, %s1520_s16   ;;  %s1003_s15 = sphi %s1057_s15, %s1519_s15   ;;  %s999_s14 = sphi %s1055_s14, %s1512_s14   ;;  %s995_s13 = sphi %s1053_s13, %s1518_s13   ;;  %s991_s12 = sphi %s1051_s12, %s1517_s12   ;;  %s987_s11 = sphi %s1049_s11, %s1510_s11   ;;  %s983_s10 = sphi %s1047_s10, %s1516_s10   ;;  %s979_s9 = sphi %s1045_s9, %s1515_s9  }
   0xe   : > { %1494 = sst [smem:[#allocation13_spill]] %s999_s14  ;;  %s663_s21 = sadd.s32 4294967294, %s1019_s19  }
   0xf   : > { %s30_s22 = sadd.s32 1, %s1011_s17  ;;  %s33_s23 = sadd.s32 1, %s1015_s18 }
  0x10   : > { %p31_p0 = scmp.ge.s32.totalorder %s30_s22, 2  ;;  %s42_s24 = sadd.s32 1, %s999_s14 }
  0x11   : > { %p49_p1 = scmp.ne.s32.totalorder %s999_s14, %s995_s13  ;;  %p50_p2 = scmp.eq.s32.totalorder %s1019_s19, 0 }
  0x12   : > { %s1524_s22 = smov (%p31_p0, %s30_s22), 0  ;;  %s1526_s23 = smov (!%p31_p0, %s33_s23), %s1015_s18 }
  0x13   : > { %1495 = sst [smem:[#allocation14_spill]] %s1524_s22  ;;  %s38_s25 = ssub.s32 %s1011_s17, %s1524_s22 }
  0x14   : > { %p1111_p3 = por %p50_p2, %p49_p1  ;;  %p35_p4 = scmp.ge.s32.totalorder %s1526_s23, 2 }
  0x15   : > { %p55_p5 = scmp.ne.s32.totalorder %s995_s13, %s991_s12  ;;  %p56_p6 = scmp.eq.s32.totalorder %s662_s20, 0 }
  0x16   : > { %s96_s27 = sadd.s32 1, %s987_s11  ;;  %s1528_s23 = smov (%p35_p4, %s1526_s23), 0 }
  0x17   : > { %1497 = sst [smem:[#allocation15_spill]] %s1528_s23  ;;  %p1119_p7 = por %p56_p6, %p55_p5 }
  0x18   : > { %p106_p8 = scmp.ne.s32.totalorder %s987_s11, %s983_s10  ;;  %s37_s29 = ssub.s32 %s1015_s18, %s1528_s23 }
  0x19   : > { %s1498_s28 = scalar_select %p1119_p7, 1, 0 }
  0x1a   : > { %p107_p9 = scmp.eq.s32.totalorder %s662_s20, 3  ;;  %s39_s30 = sor.u32 %s38_s25, %s37_s29 }
  0x1b   : > { %p94_p10 = scmp.eq.s32.totalorder %s37_s29, 0  ;;  %p40_p11 = scmp.eq.s32.totalorder %s39_s30, 0 }
  0x1c   : > { %p1127_p12 = por %p107_p9, %p106_p8  ;;  %p112_p13 = scmp.ne.s32.totalorder %s983_s10, %s979_s9 }
  0x1d   : > { %s1132_s4 = scalar_select %p94_p10, %s987_s11, %s96_s27  }
  0x1e   : > { %s1499_s3 = scalar_select %p1127_p12, 1, 0 }
  0x1f   : > { %1500 = sst [smem:[#allocation16_spill]] %s1132_s4  ;;  %p113_p0 = scmp.eq.s32.totalorder %s663_s21, 3 }
  0x20   : > { %s1135_s5 = scalar_select %p40_p11, %s999_s14, %s42_s24  }
  0x21   : > { %p713_p1 = scmp.lt.s32.totalorder %s1019_s19, 4  ;;  %p1140_p2 = por %p113_p0, %p112_p13 }
  0x22   : > { %1501 = sst [smem:[#allocation17_spill]] %s1135_s5  ;;  %s1145_s7 = sand.u32 1, %s999_s14  }
  0x23   : > { %s1502_s6 = scalar_select %p1140_p2, 1, 0 }
  0x24   : > { %s690_s8 = smul.u32 72, %s1145_s7  ;;  %p1151_p4 = pnand %p713_p1, %p1111_p3 }
  0x25   : > { %s691_s12 = smul.u32 18, %s1015_s18  ;;  %s1504_s0 = sld [smem:[#allocation18_spill]] }
  0x26   : > { %s137_s21 = scalar_lea.vmem [#allocation3], %s690_s8  ;;  %s134_s26 = scalar_lea.sflag [#allocation4], %s1145_s7 }
  0x27   : > { %s142_s24 = sadd.s32 %s1011_s17, %s691_s12  ;;  %s145_s25 = sshll.u32 %s137_s21, 4  ;;  %s1156_s25 = int_to_ptr.vmem [resolvable:$true] %s145_s25 }
  0x28   : > { %s666_s27 = sshll.u32 %s142_s24, 7  ;;  %p835_p5 = pneg %p1151_p4 }
  0x2b   : > { %s1161_s23 = scalar_lea.hbm %s1504_s0, %s666_s27  ;;  %s838_s24 = scalar_lea.hbm %s1504_s0, 4608 }
  0x2c   : > { %s833_s22 = scalar_lea.hbm %s1161_s23, 1152  ;;  %p839_p9 = scmp.lt.u32.totalorder %s1161_s23, %s1504_s0 }
  0x2d   : > { %p834_p3 = scmp.ne.s32.totalorder %s1161_s23, %s833_s22  ;;  %p840_p10 = scmp.lt.u32.totalorder %s838_s24, %s833_s22 }
  0x2e   : > { %p842_p13 = scmp.lt.u32.totalorder %s833_s22, %s1161_s23 }
  0x2f   : > { %p836_p6 = pnand %p835_p5, %p834_p3  ;;  %p841_p11 = por %p840_p10, %p839_p9 }
  0x31   : > { %p837_p8 = pneg %p836_p6  ;;  %p843_p0 = por %p842_p13, %p841_p11 }
  0x33   : > { %p844_p1 = pnand %p843_p0, %p837_p8 }
  0x35   : > { %847 = shalt.err (!%p844_p1)
}
  0x36   : > { %s848_s29 = scalar_lea.vmem %s1156_s25, 1152  ;;  %s1021_s30 = smov [#allocation3]  }
  0x37   : > { %p849_p3 = scmp.ne.s32.totalorder %s1156_s25, %s848_s29  ;;  %s853_s8 = sshll.u32 %s1021_s30, 4  ;;  %s854_s8 = int_to_ptr.vmem [resolvable:$false] %s853_s8 }
  0x38   : > { %s855_s12 = scalar_lea.vmem %s854_s8, 2304  ;;  %p856_p12 = scmp.lt.s32.totalorder %s1156_s25, %s854_s8 }
  0x39   : > { %p851_p6 = pnand %p849_p3, %p835_p5  ;;  %p857_p9 = scmp.lt.s32.totalorder %s855_s12, %s848_s29 }
  0x3b   : > { %p852_p2 = pneg %p851_p6  ;;  %p858_p10 = por %p857_p9, %p856_p12 }
  0x3d   : > { %p859_p11 = pnand %p858_p10, %p852_p2 }
  0x3f   : > { %862 = shalt.err (!%p859_p11)
}
  0x40   : > { %s1022_s22 = smov 256   ;;  %s1023_s24 = smov 128  }
  0x41   : > { %s1024_s21 = smov 8   ;;  %p668_p12 = scmp.ge.s32.totalorder %s1019_s19, 1 }
  0x42   : > { %705 = dma.hbm_to_vmem [thread:$0]  (!%p1151_p4), %s1161_s23, 1152, %s1156_s25, %s134_s26, %s1022_s22, %s1023_s24, %s1024_s21  }
  0x43   : > { %p175_p2 = scmp.lt.s32.totalorder %s1019_s19, 5  ;;  %s692_s27 = smul.u32 24, %s1145_s7 }
  0x44   : > { %s693_s30 = smul.u32 6, %s1015_s18  ;;  %s156_s23 = scalar_lea.sflag [#allocation7], %s1145_s7 }
  0x45   : > { %p1197_p8 = pnand %p668_p12, %p175_p2  ;;  %s159_s12 = scalar_lea.vmem [#allocation6], %s692_s27 }
  0x46   : > { %s164_s8 = sadd.s32 %s1011_s17, %s693_s30  ;;  %s167_s0 = sshll.u32 %s159_s12, 4  ;;  %s1203_s0 = int_to_ptr.vmem [resolvable:$true] %s167_s0 }
  0x47   : > { %s667_s5 = sshll.u32 %s164_s8, 7  ;;  %s868_s30 = scalar_lea.hbm %s1484_s1, 1536 }
  0x48   : > { %s1208_s11 = scalar_lea.hbm %s1484_s1, %s667_s5 }
  0x49   : > { %s863_s25 = scalar_lea.hbm %s1208_s11, 384  ;;  %p869_p3 = scmp.lt.u32.totalorder %s1208_s11, %s1484_s1 }
  0x4a   : > { %p864_p13 = scmp.ne.s32.totalorder %s1208_s11, %s863_s25  ;;  %p870_p6 = scmp.lt.u32.totalorder %s868_s30, %s863_s25 }
  0x4b   : > { %p872_p10 = scmp.lt.u32.totalorder %s863_s25, %s1208_s11 }
  0x4c   : > { %p866_p0 = pnand %p864_p13, %p835_p5  ;;  %p871_p9 = por %p870_p6, %p869_p3 }
  0x4e   : > { %p867_p1 = pneg %p866_p0  ;;  %p873_p11 = por %p872_p10, %p871_p9 }
  0x50   : > { %p874_p12 = pnand %p873_p11, %p867_p1 }
  0x52   : > { %877 = shalt.err (!%p874_p12)
}
  0x53   : > { %s878_s14 = scalar_lea.vmem %s1203_s0, 384  ;;  %s1025_s4 = smov [#allocation6]  }
  0x54   : > { %p879_p2 = scmp.ne.s32.totalorder %s1203_s0, %s878_s14  ;;  %s883_s5 = sshll.u32 %s1025_s4, 4  ;;  %s884_s5 = int_to_ptr.vmem [resolvable:$false] %s883_s5 }
  0x55   : > { %s885_s26 = scalar_lea.vmem %s884_s5, 768  ;;  %p886_p7 = scmp.lt.s32.totalorder %s1203_s0, %s884_s5 }
  0x56   : > { %p881_p13 = pnand %p879_p2, %p835_p5  ;;  %p887_p3 = scmp.lt.s32.totalorder %s885_s26, %s878_s14 }
  0x58   : > { %p882_p0 = pneg %p881_p13  ;;  %p888_p6 = por %p887_p3, %p886_p7 }
  0x5a   : > { %p889_p9 = pnand %p888_p6, %p882_p0 }
  0x5c   : > { %892 = shalt.err (!%p889_p9)
}
  0x5d   : > { %708 = dma.hbm_to_vmem [thread:$0]  (!%p1151_p4), %s1208_s11, 384, %s1203_s0, %s156_s23, %s1022_s22, %s1023_s24, %s1024_s21  }
  0x5e   : > { %179 = sbr.rel (%p1197_p8) target bundleno = 506 (0x1fa), region = 28  ;;  %s181_s25 = sand.u32 (!%p1197_p8), 1, %s995_s13  }
  0x5f   : > { %s694_s27 = smul.u32 (!%p1197_p8), 72, %s181_s25  ;;  %s182_s30 = scalar_lea.sflag (!%p1197_p8), [#allocation4], %s181_s25 }
  0x60   : > { %p1506_p7 = scmp.ne.s32.totalorder (!%p1197_p8), %s1498_s28, 0 }
  0x61   : > { %s1242_s8 = scalar_lea.vmem (!%p1197_p8), [#allocation3], %s694_s27 }
  0x65   : > { %966 = dma.done.wait (%p1506_p7), %s182_s30, 1152  }
  0x66   : > { %968 = vsyncadd (%p1506_p7), %s182_s30, 4294966144  ;;  %s695_s7 = smul.u32 24, %s181_s25  ;;  %s191_s20 = scalar_lea.sflag [#allocation7], %s181_s25 }
  0x68   : > { %s1248_s12 = scalar_lea.vmem [#allocation6], %s695_s7 }
  0x69   : > { %970 = dma.done.wait (%p1506_p7), %s191_s20, 384  }
  0x6a   : > { %972 = vsyncadd (%p1506_p7), %s191_s20, 4294966912  ;;  %s217_s0 = sand.u32 1, %s983_s10   ;;  %p669_p4 = scmp.ne.s32.totalorder %s1003_s15, 0 }
  0x6b   : > { %s1257_s11 = scalar_lea.vmem [#allocation8], %s217_s0  ;;  %v1026_v0 = vmov (!%p669_p4), 0.0  }
  0x6c   : > { %222 = sbr.rel (%p669_p4) target bundleno = 115 (0x73), region = 40  ;;  %223 = vst [vmem:[#allocation2] sm:$0xff] (!%p669_p4), %v1026_v0  ;;  %224 = vst [vmem:[#allocation2 + $0x8] sm:$0xff] (!%p669_p4), %v1026_v0 }
  0x6d   : > { %225 = vst [vmem:[#allocation2 + $0x10] sm:$0xff] (!%p669_p4), %v1026_v0  ;;  %226 = vst [vmem:[#allocation2 + $0x18] sm:$0xff] (!%p669_p4), %v1026_v0 }
  0x6e   : > { %227 = vst [vmem:[#allocation2 + $0x20] sm:$0xff] (!%p669_p4), %v1026_v0  ;;  %228 = vst [vmem:[#allocation2 + $0x28] sm:$0xff] (!%p669_p4), %v1026_v0 }
  0x6f   : > { %229 = vst [vmem:[#allocation2 + $0x30] sm:$0xff] (!%p669_p4), %v1026_v0  ;;  %230 = vst [vmem:[#allocation2 + $0x38] sm:$0xff] (!%p669_p4), %v1026_v0 }
  0x70   : > { %231 = vst [vmem:[#allocation2 + $0x40] sm:$0xff] (!%p669_p4), %v1026_v0 }
  0x73 PF: > { %v1261_v1 = vld [vmem:[%s1242_s8] sm:$0xff]  ;;  %v1264_v2 = vld [vmem:[%s1242_s8 + $0x18] sm:$0xff]  ;;  %v1267_v3 = vld [vmem:[%s1242_s8 + $0x30] sm:$0xff]  ;;  %v232_v19 = vlaneseq  ;;  %s670_s28 = sshll.u32 %s1003_s15, 10  ;;  %v1027_v58 = vmov 1.0   ;;  %v1028_v0 = vmov 0.0  }
  0x74   : > { %v249_v4 = vmax.f32 %v1261_v1, %v1264_v2  ;;  %v1281_v9 = vld [vmem:[%s1242_s8 + $0x8] sm:$0xff]  ;;  %v1284_v10 = vld [vmem:[%s1242_s8 + $0x20] sm:$0xff]  ;;  %v1287_v11 = vld [vmem:[%s1242_s8 + $0x38] sm:$0xff]  ;;  %v239_v44 = vstv %s670_s28  ;;  %p686_p5 = scmp.ne.s32.totalorder %s1003_s15, 1 }
  0x75   : > { %v311_v15 = vmax.f32 %v1281_v9, %v1284_v10  ;;  %v1295_v17 = vld [vmem:[%s1242_s8 + $0x10] sm:$0xff]  ;;  %v1298_v18 = vld [vmem:[%s1242_s8 + $0x28] sm:$0xff]  ;;  %v1303_v21 = vld [vmem:[%s1242_s8 + $0x40] sm:$0xff]  ;;  %v1314_v29 = vshrl.u32 %v232_v19, 7  ;;  %v1323_v39 = vand.u32 127, %v232_v19  ;;  %vm503_vm7 = vcmask (!%p686_p5), 1041409  }
  0x76   : > { %v1272_v5 = vmax.f32 %v249_v4, %v1267_v3  ;;  %v372_v24 = vmax.f32 %v1295_v17, %v1298_v18  ;;  %v1328_v49 = vld [vmem:[%s1248_s12] sm:$0xff]  ;;  %v1331_v50 = vld [vmem:[%s1248_s12 + $0x8] sm:$0xff]  ;;  %v1334_v51 = vld [vmem:[%s1248_s12 + $0x10] sm:$0xff]  ;;  %vm505_vm8 = vcmask (!%p686_p5), 1042434   ;;  %vm507_vm9 = vcmask (!%p686_p5), 1043459  }
  0x77   : > { %v1292_v16 = vmax.f32 %v311_v15, %v1287_v11  ;;  %v234_v38 = vmul.u32 128, %v1314_v29  ;;  %vm266_vm0 = vcmp.eq.s32.totalorder %v1328_v49, 0  ;;  %vm267_vm1 = vcmp.eq.s32.totalorder %v1328_v49, 1 }
  0x78   : > { %v251_v6 = vsub.f32 %v1261_v1, %v1272_v5  ;;  %v254_v7 = vsub.f32 %v1264_v2, %v1272_v5  ;;  %v258_v8 = vsub.f32 %v1267_v3, %v1272_v5  ;;  %v1312_v28 = vmax.f32 %v372_v24, %v1303_v21 }
  0x79   : > { %v313_v20 = vsub.f32 %v1281_v9, %v1292_v16  ;;  %v316_v22 = vsub.f32 %v1284_v10, %v1292_v16  ;;  %v320_v23 = vsub.f32 %v1287_v11, %v1292_v16  ;;  %v237_v43 = vadd.s32 %v1323_v39, %v234_v38 }
  0x7a   : > { %v252_v12 = vmul.f32 1.442695, %v251_v6  ;;  %v255_v13 = vmul.f32 1.442695, %v254_v7  ;;  %v259_v14 = vmul.f32 1.442695, %v258_v8  ;;  %v374_v30 = vsub.f32 %v1295_v17, %v1312_v28 }
  0x7b   : > { %v314_v25 = vmul.f32 1.442695, %v313_v20  ;;  %v317_v26 = vmul.f32 1.442695, %v316_v22  ;;  %v321_v27 = vmul.f32 1.442695, %v320_v23  ;;  %v377_v31 = vsub.f32 %v1298_v18, %v1312_v28 }
  0x7c   : > { %809 = vpow2.f32 %v252_v12  ;;  %v381_v32 = vsub.f32 %v1303_v21, %v1312_v28  ;;  %v375_v34 = vmul.f32 1.442695, %v374_v30  ;;  %v240_v48 = vadd.s32 %v239_v44, %v237_v43  ;;  %v301_v30 = vld [vmem:[#allocation2 + $0x30] sm:$0xff] }
  0x7d   : > { %811 = vpow2.f32 %v255_v13  ;;  %v378_v35 = vmul.f32 1.442695, %v377_v31  ;;  %vm280_vm2 = vcmp.eq.s32.totalorder %v1331_v50, 1  ;;  %vm294_vm3 = vcmp.eq.s32.totalorder %v1334_v51, 1 }
  0x7e   : > { %813 = vpow2.f32 %v259_v14  ;;  %v382_v36 = vmul.f32 1.442695, %v381_v32  ;;  %vm241_vm4 = vcmp.lt.s32.totalorder %v240_v48, 1500  ;;  %vm279_vm5 = vcmp.eq.s32.totalorder %v1331_v50, 0  ;;  %v349_v48 = vld [vmem:[#allocation2 + $0x20] sm:$0xff]  ;;  %v397_v50 = vld [vmem:[#allocation2 + $0x10] sm:$0xff] }
  0x7f   : > { %815 = vpow2.f32 %v314_v25  ;;  %vm293_vm6 = vcmp.eq.s32.totalorder %v1334_v51, 0  ;;  %v268_v59 = vsel %vm266_vm0, 1.6, %v1027_v58  ;;  %v270_v60 = vsel %vm267_vm1, %v1264_v2, %v1267_v3 }
  0x80   : > { %817 = vpow2.f32 %v317_v26  ;;  %v283_v61 = vsel %vm280_vm2, %v1264_v2, %v1267_v3  ;;  %v297_v62 = vsel %vm294_vm3, %v1264_v2, %v1267_v3  ;;  %v671_v4 = vsel %vm241_vm4, 1.0, %v1028_v0  ;;  %v410_v0 = vld [vmem:[#allocation2 + $0x28] sm:$0xff] }
  0x81   : > { %819 = vpow2.f32 %v321_v27  ;;  %v281_v6 = vsel %vm279_vm5, 1.6, %v1027_v58  ;;  %v295_v7 = vsel %vm293_vm6, 1.6, %v1027_v58  ;;  %v271_v13 = vsel %vm266_vm0, %v1261_v1, %v270_v60  ;;  %v287_v27 = vld [vmem:[#allocation2 + $0x18] sm:$0xff] }
  0x82   : > { %821 = vpow2.f32 %v375_v34  ;;  %v284_v14 = vsel %vm279_vm5, %v1261_v1, %v283_v61  ;;  %v298_v2 = vsel %vm293_vm6, %v1261_v1, %v297_v62  ;;  %v269_v15 = vmul.f32 %v671_v4, %v268_v59  ;;  %v273_v1 = vld [vmem:[#allocation2] sm:$0xff] }
  0x83   : > { %823 = vpow2.f32 %v378_v35  ;;  %v282_v19 = vmul.f32 %v671_v4, %v281_v6  ;;  %v296_v20 = vmul.f32 %v671_v4, %v295_v7  ;;  %v332_v22 = vsel %vm267_vm1, %v1284_v10, %v1287_v11  ;;  %v423_v4 = vld [vmem:[#allocation2 + $0x40] sm:$0xff] }
  0x84   : > { %825 = vpow2.f32 %v382_v36  ;;  %v345_v26 = vsel %vm280_vm2, %v1284_v10, %v1287_v11  ;;  %v333_v36 = vsel %vm266_vm0, %v1281_v9, %v332_v22  ;;  %v406_v43 = vsel %vm280_vm2, %v1298_v18, %v1303_v21 }
  0x85   : > { %vm509_vm10 = vcmask (!%p686_p5), 1044484   ;;  %vm511_vm11 = vcmask (!%p686_p5), 1045509   ;;  %vm513_vm12 = vcmask (!%p686_p5), 1046534   ;;  %vm515_vm13 = vcmask (!%p686_p5), 1047559  }
  0x86   : > { %v810_v33 = vpop.eup %809  ;;  %vm519_vm14 = vcmask (!%p686_p5), 64512   ;;  %vm523_vm15 = vcmask (!%p686_p5), 57344  }
  0x87   : > { %v812_v37 = vpop.eup %811 }
  0x88   : > { %v814_v40 = vpop.eup %813  ;;  %v257_v41 = vadd.f32 %v812_v37, %v810_v33  ;;  %v346_v37 = vsel %vm279_vm5, %v1281_v9, %v345_v26 }
  0x89   : > { %v816_v45 = vpop.eup %815 }
  0x8a   : > { %v261_v42 = vadd.f32 %v814_v40, %v257_v41  ;;  %v818_v46 = vpop.eup %817 }
  0x8b   : > { %v820_v47 = vpop.eup %819  ;;  %v319_v52 = vadd.f32 %v818_v46, %v816_v45 }
  0x8c   : > { %827 = vlog2.f32 %v261_v42  ;;  %v822_v54 = vpop.eup %821  ;;  %v393_v42 = vsel %vm267_vm1, %v1298_v18, %v1303_v21  ;;  %vm543_vm1 = vcmask (!%p686_p5), 65536  }
  0x8d   : > { %v323_v53 = vadd.f32 %v820_v47, %v319_v52  ;;  %v824_v55 = vpop.eup %823  ;;  %v336_v47 = vld [vmem:[#allocation2 + $0x8] sm:$0xff]  ;;  %v362_v52 = vld [vmem:[#allocation2 + $0x38] sm:$0xff] }
  0x8e   : > { %v826_v56 = vpop.eup %825  ;;  %v380_v57 = vadd.f32 %v824_v55, %v822_v54  ;;  %v394_v54 = vsel %vm266_vm0, %v1295_v17, %v393_v42  ;;  %v407_v55 = vsel %vm279_vm5, %v1295_v17, %v406_v43  ;;  %vm540_vm0 = vcmask (!%p686_p5), 130112  }
  0x8f   : > { %829 = vlog2.f32 %v323_v53 }
  0x90   : > { %v384_v8 = vadd.f32 %v826_v56, %v380_v57 }
  0x92   : > { %831 = vlog2.f32 %v384_v8 }
  0x96   : > { %v828_v63 = vpop.eup %827 }
  0x97   : > { %v263_v12 = vmul.f32 0.6931472, %v828_v63 }
  0x99   : > { %v264_v3 = vadd.f32 %v263_v12, %v1272_v5  ;;  %v358_v5 = vsel %vm294_vm3, %v1284_v10, %v1287_v11  ;;  %v830_v31 = vpop.eup %829 }
  0x9a   : > { %v325_v35 = vmul.f32 0.6931472, %v830_v31  ;;  %v359_v10 = vsel %vm293_vm6, %v1281_v9, %v358_v5  ;;  %v419_v9 = vsel %vm294_vm3, %v1298_v18, %v1303_v21 }
  0x9b   : > { %v272_v23 = vsub.f32 %v271_v13, %v264_v3  ;;  %v285_v24 = vsub.f32 %v284_v14, %v264_v3  ;;  %v299_v25 = vsub.f32 %v298_v2, %v264_v3  ;;  %v420_v18 = vsel %vm293_vm6, %v1295_v17, %v419_v9 }
  0x9c   : > { %v326_v11 = vadd.f32 %v325_v35, %v1292_v16  ;;  %v832_v44 = vpop.eup %831 }
  0x9d   : > { %v274_v32 = vmul.f32 %v272_v23, %v269_v15  ;;  %v288_v33 = vmul.f32 %v285_v24, %v282_v19  ;;  %v302_v34 = vmul.f32 %v299_v25, %v296_v20  ;;  %v386_v53 = vmul.f32 0.6931472, %v832_v44 }
  0x9e   : > { %v334_v16 = vsub.f32 %v333_v36, %v326_v11  ;;  %v347_v45 = vsub.f32 %v346_v37, %v326_v11  ;;  %v360_v46 = vsub.f32 %v359_v10, %v326_v11  ;;  %v469_v25 = vsub.s32 (!%p686_p5), %v1323_v39, %v1314_v29 }
  0x9f   : > { %v275_v38 = vsub.f32 %v273_v1, %v274_v32  ;;  %v289_v40 = vsub.f32 %v287_v27, %v288_v33  ;;  %v303_v41 = vsub.f32 %v301_v30, %v302_v34  ;;  %v387_v21 = vadd.f32 %v386_v53, %v1312_v28 }
  0xa0   : > { %v337_v56 = vmul.f32 %v334_v16, %v269_v15  ;;  %v350_v57 = vmul.f32 %v347_v45, %v282_v19  ;;  %v363_v58 = vmul.f32 %v360_v46, %v296_v20 }
  0xa1   : > { %276 = vst [vmem:[#allocation2] sm:$0xff] %v275_v38  ;;  %290 = vst [vmem:[#allocation2 + $0x18] sm:$0xff] %v289_v40  ;;  %v395_v62 = vsub.f32 %v394_v54, %v387_v21  ;;  %v408_v63 = vsub.f32 %v407_v55, %v387_v21  ;;  %v421_v49 = vsub.f32 %v420_v18, %v387_v21 }
  0xa2   : > { %304 = vst [vmem:[#allocation2 + $0x30] sm:$0xff] %v303_v41  ;;  %v338_v59 = vsub.f32 %v336_v47, %v337_v56  ;;  %v351_v60 = vsub.f32 %v349_v48, %v350_v57  ;;  %v364_v61 = vsub.f32 %v362_v52, %v363_v58  ;;  %430 = sbr.rel (%p686_p5) target bundleno = 481 (0x1e1), region = 44  ;;  %v535_v48 = vadd.s32 (!%p686_p5), 4294967288, %v1323_v39 }
  0xa3   : > { %v398_v6 = vmul.f32 %v395_v62, %v269_v15  ;;  %v411_v7 = vmul.f32 %v408_v63, %v282_v19  ;;  %v424_v8 = vmul.f32 %v421_v49, %v296_v20 }
  0xa4   : > { %339 = vst [vmem:[#allocation2 + $0x8] sm:$0xff] %v338_v59  ;;  %352 = vst [vmem:[#allocation2 + $0x20] sm:$0xff] %v351_v60  ;;  %v538_v54 = vsub.s32 (!%p686_p5), %v535_v48, %v1314_v29 }
  0xa5   : > { %365 = vst [vmem:[#allocation2 + $0x38] sm:$0xff] %v364_v61  ;;  %v399_v12 = vsub.f32 %v397_v50, %v398_v6  ;;  %v412_v51 = vsub.f32 %v410_v0, %v411_v7  ;;  %v425_v17 = vsub.f32 %v423_v4, %v424_v8 }
  0xa7   : > { %400 = vst [vmem:[#allocation2 + $0x10] sm:$0xff] %v399_v12  ;;  %413 = vst [vmem:[#allocation2 + $0x28] sm:$0xff] %v412_v51 }
  0xa8   : > { %426 = vst [vmem:[#allocation2 + $0x40] sm:$0xff] %v425_v17  ;;  %v431_v28 = vld [vmem:[#allocation2] sm:$0xff] (!%p686_p5)  ;;  %v434_v2 = vld [vmem:[#allocation2 + $0x18] sm:$0xff] (!%p686_p5) }
  0xa9   : > { %440 = vadd.xlane.f32.xlu0 %v431_v28  ;;  %v437_v19 = vld [vmem:[#allocation2 + $0x30] sm:$0xff] }
  0xab   : > { %v432_v14 = vld [vmem:[#allocation2 + $0x8] sm:$0xff]  ;;  %v435_v3 = vld [vmem:[#allocation2 + $0x20] sm:$0xff] }
  0xac   : > { %v438_v20 = vld [vmem:[#allocation2 + $0x38] sm:$0xff] }
  0xad   : > { %442 = vadd.xlane.f32.xlu0 %v432_v14 }
  0xae   : > { %v433_v13 = vld [vmem:[#allocation2 + $0x10] sm:$0xff]  ;;  %v436_v15 = vld [vmem:[#allocation2 + $0x28] sm:$0xff] }
  0xaf   : > { %444 = vadd.xlane.f32.xlu1 %v433_v13  ;;  %v439_v22 = vld [vmem:[#allocation2 + $0x40] sm:$0xff] }
  0xb1   : > { %448 = vadd.xlane.f32.xlu0 %v435_v3 }
  0xb3   : > { %446 = vadd.xlane.f32.xlu1 %v434_v2 }
  0xb5   : > { %452 = vadd.xlane.f32.xlu0 %v437_v19 }
  0xb7   : > { %450 = vadd.xlane.f32.xlu1 %v436_v15 }
  0xb9   : > { %456 = vadd.xlane.f32.xlu0 %v439_v22 }
  0xbb   : > { %454 = vadd.xlane.f32.xlu1 %v438_v20 }
 0x136   : > { %v441_v23 = vpop.xlane.xlu0 %440 }
 0x137   : > { %v470_v27 = vrot.slane %v441_v23, %v469_v25 }
 0x13a   : > { %v443_v26 = vpop.xlane.xlu0 %442 }
 0x13b   : > { %v474_v30 = vrot.slane %v443_v26, %v469_v25 }
 0x13c   : > { %v445_v24 = vpop.xlane.xlu1 %444 }
 0x13d   : > { %v478_v31 = vrot.slane %v445_v24, %v469_v25  ;;  %v504_v32 = vsel %vm503_vm7, %v474_v30, %v470_v27 }
 0x13e   : > { %v449_v34 = vpop.xlane.xlu0 %448 }
 0x13f   : > { %v506_v33 = vsel %vm505_vm8, %v478_v31, %v504_v32  ;;  %v486_v37 = vrot.slane %v449_v34, %v469_v25 }
 0x140   : > { %v447_v1 = vpop.xlane.xlu1 %446 }
 0x141   : > { %v482_v5 = vrot.slane %v447_v1, %v469_v25 }
 0x142   : > { %v453_v41 = vpop.xlane.xlu0 %452 }
 0x143   : > { %v508_v36 = vsel %vm507_vm9, %v482_v5, %v506_v33  ;;  %v494_v11 = vrot.slane %v453_v41, %v469_v25 }
 0x144   : > { %v451_v35 = vpop.xlane.xlu1 %450  ;;  %v510_v40 = vsel %vm509_vm10, %v486_v37, %v508_v36 }
 0x145   : > { %v490_v38 = vrot.slane %v451_v35, %v469_v25 }
 0x146   : > { %v457_v44 = vpop.xlane.xlu0 %456 }
 0x147   : > { %v512_v43 = vsel %vm511_vm11, %v490_v38, %v510_v40  ;;  %v502_v45 = vrot.slane %v457_v44, %v469_v25 }
 0x148   : > { %v455_v10 = vpop.xlane.xlu1 %454  ;;  %v514_v9 = vsel %vm513_vm12, %v494_v11, %v512_v43 }
 0x149   : > { %v498_v42 = vrot.slane %v455_v10, %v469_v25  ;;  %v524_v47 = vsel %vm523_vm15, %v502_v45, 0.0 }
 0x14a   : > { %525 = vadd.xlane.f32.xlu0 %v524_v47 }
 0x14b   : > { %v516_v16 = vsel %vm515_vm13, %v498_v42, %v514_v9 }
 0x14c   : > { %v520_v46 = vsel %vm519_vm14, %v516_v16, 0.0 }
 0x14d   : > { %521 = vadd.xlane.f32.xlu1 %v520_v46 }
 0x1d7   : > { %v526_v55 = vpop.xlane.xlu0 %525 }
 0x1d8   : > { %v528_v56 = vmul.f32 0.00066666666, %v526_v55 }
 0x1da   : > { %v522_v52 = vpop.xlane.xlu1 %521  ;;  %v539_v58 = vrot.slane %v528_v56, %v538_v54 }
 0x1db   : > { %v527_v53 = vmul.f32 0.00066666666, %v522_v52 }
 0x1dd   : > { %v534_v57 = vrot.slane %v527_v53, %v469_v25 }
 0x1df   : > { %v541_v18 = vsel %vm540_vm0, %v539_v58, %v534_v57 }
 0x1e0   : > { %544 = vst.msk [vmem:[%s1257_s11] sm:$0x1] %vm543_vm1, %v541_v18 }
 0x1e1 PF: > { %s687_s15 = sshll.u32 %s1007_s16, 4  ;;  %s558_s29 = sshll.u32 %s1257_s11, 4  ;;  %s559_s29 = int_to_ptr.vmem [resolvable:$true] %s558_s29 }
 0x1e2   : > { %s1424_s21 = scalar_lea.hbm %s1485_s2, %s687_s15  ;;  %s546_s23 = scalar_lea.sflag [#allocation5], %s217_s0 }
 0x1e3   : > { %s893_s14 = scalar_lea.vmem %s559_s29, 16  ;;  %p1507_p1 = scmp.ne.s32.totalorder %s1499_s3, 0 }
 0x1e4   : > { %p894_p8 = scmp.ne.s32.totalorder %s559_s29, %s893_s14  ;;  %s1029_s4 = smov [#allocation8]  }
 0x1e5   : > { %s897_s5 = sshll.u32 %s1029_s4, 4  ;;  %s898_s5 = int_to_ptr.vmem [resolvable:$false] %s897_s5 }
 0x1e6   : > { %p895_p10 = pnand %p894_p8, %p1507_p1  ;;  %s899_s26 = scalar_lea.vmem %s898_s5, 32 }
 0x1e7   : > { %p900_p12 = scmp.lt.s32.totalorder %s559_s29, %s898_s5  ;;  %p901_p2 = scmp.lt.s32.totalorder %s899_s26, %s893_s14 }
 0x1e8   : > { %p896_p11 = pneg %p895_p10 }
 0x1e9   : > { %p902_p13 = por %p901_p2, %p900_p12 }
 0x1eb   : > { %p903_p0 = pnand %p902_p13, %p896_p11 }
 0x1ed   : > { %906 = shalt.err (!%p903_p0)
}
 0x1ee   : > { %s907_s16 = scalar_lea.hbm %s1424_s21, 16  ;;  %s911_s30 = scalar_lea.hbm %s1485_s2, 32 }
 0x1ef   : > { %p908_p3 = scmp.ne.s32.totalorder %s1424_s21, %s907_s16  ;;  %p912_p7 = scmp.lt.u32.totalorder %s1424_s21, %s1485_s2 }
 0x1f0   : > { %p913_p4 = scmp.lt.u32.totalorder %s911_s30, %s907_s16  ;;  %p915_p8 = scmp.lt.u32.totalorder %s907_s16, %s1424_s21 }
 0x1f1   : > { %p909_p6 = pnand %p908_p3, %p1507_p1 }
 0x1f2   : > { %p914_p5 = por %p913_p4, %p912_p7 }
 0x1f3   : > { %p910_p9 = pneg %p909_p6 }
 0x1f4   : > { %p916_p10 = por %p915_p8, %p914_p5 }
 0x1f6   : > { %p917_p11 = pnand %p916_p10, %p910_p9 }
 0x1f8   : > { %920 = shalt.err (!%p917_p11)
}
 0x1f9   : > { %700 = dma.vmem_to_hbm [thread:$0]  (%p1507_p1), %s559_s29, 16, %s1424_s21, %s546_s23  }
 0x1fa PF: > { %p714_p12 = scmp.ge.s32.totalorder %s1019_s19, 2  ;;  %s570_s20 = sand.u32 1, %s979_s9  }
 0x1fb   : > { %p1508_p2 = scmp.ne.s32.totalorder %s1502_s6, 0  ;;  %s571_s12 = scalar_lea.sflag [#allocation5], %s570_s20 }
 0x1fd   : > { %p710_p13 = pnand %p714_p12, %p1508_p2 }
 0x1ff   : > { %974 = dma.done.wait (!%p710_p13), %s571_s12, 16  }
 0x200   : > { %976 = vsyncadd (!%p710_p13), %s571_s12, 4294967280  ;;  %s21_s19 = sadd.s32 1, %s1019_s19   ;;  %s1509_s0 = sld [smem:[#allocation12_spill]] }
 0x201   : > { %p18_p0 = scmp.ge.s32.totalorder %s21_s19, 6   ;;  %s1510_s11 = sld [smem:[#allocation16_spill]] }
 0x202   : > { %s1511_s3 = sld [smem:[#allocation13_spill]]  ;;  %s1512_s14 = sld [smem:[#allocation17_spill]] }
 0x203   : > { %s1513_s28 = sld [smem:[#allocation14_spill]]  ;;  %s1514_s22 = sld [smem:[#allocation15_spill]] }
 0x204   : > { %s1515_s9 = smov %s983_s10  ;;  %s1517_s12 = smov %s995_s13 }
 0x205   : > { %s1519_s15 = smov %s1011_s17  ;;  %s1520_s16 = smov %s1015_s18 }
 0x206   : > { %s1516_s10 = smov %s1509_s0  ;;  %20 = sbr.rel (!%p18_p0) target bundleno = 13 (0xd), region = 112 }
 0x208   : > { %s1518_s13 = smov %s1511_s3 }
 0x209   : > { %s1521_s17 = smov %s1513_s28  ;;  %s1522_s18 = smov %s1514_s22 }
 0x20d   :  { %575 = vsyncpa [#allocation4], 1 }
 0x20e   :  { %577 = vsyncpa [#allocation4 + $0x1], 1 }
 0x20f   :  { %578 = vsyncpa [#allocation7], 1 }
 0x210   :  { %580 = vsyncpa [#allocation7 + $0x1], 1 }
 0x211   :  { %581 = vsyncpa [#allocation5], 1 }
 0x212   :  { %583 = vsyncpa [#allocation5 + $0x1], 1 }

</bundles_post_ra>
